<compile_context>
chip_gen: v7x
topology: tpu7x:2x2x1
jax: 0.10.0
libtpu: 0.0.40
codegen_flags: <defaults>
</compile_context>

<pallas_src>
import itertools

import numpy as np
import jax
import jax.numpy as jnp
from jax.experimental import pallas as pl
from jax.experimental.pallas import tpu as pltpu

# Matcher coefficients (module defaults) and focal-loss constants.
COEF_CLASS = 2.0
COEF_BBOX = 5.0
COEF_GIOU = 2.0
ALPHA = 0.25
GAMMA = 2.0
EPS = 1e-8        # focal-loss log epsilon (matches the torch reference)
EPS_DIV = 1e-8    # safety epsilon on IoU / enclosing-area denominators

TM_MAX = 256      # sublane tile over num_queries (v6e can take 512)
TG_MAX = 512      # lane tile over per-image gt columns (v5e-safe, mult. of 128)


def _round_up(x, m):
    return ((x + m - 1) // m) * m


def _focal_pow(x):
    # GAMMA == 2 fast path; falls back to pow if the constant is ever edited.
    if GAMMA == 2.0:
        return x * x
    return x ** GAMMA


def _cost_kernel(logits_ref, pb_ref, cls_ref, gt_ref, out_ref):
    """One (TM, TG) tile of one image's matching-cost block.

    logits_ref: (TM, C_pad)  raw pred logits (f32)
    pb_ref:     (TM, 4)      predicted boxes, cxcywh (f32)
    cls_ref:    (1,  TG)     gt class ids for this image (-1 on padded columns)
    gt_ref:     (4,  TG)     gt boxes transposed, cxcywh (padded cols = dummy valid box)
    out_ref:    (TM, TG)     cost tile
    """
    c_pad = logits_ref.shape[1]
    tg = cls_ref.shape[1]

    # ---- focal class cost on the small (TM, C) tile, expanded on the MXU ----
    x = logits_ref[...]
    p = jax.nn.sigmoid(x)
    neg = (1.0 - ALPHA) * _focal_pow(p) * (-jnp.log(1.0 - p + EPS))
    pos = ALPHA * _focal_pow(1.0 - p) * (-jnp.log(p + EPS))
    d = pos - neg                                                     # (TM, C_pad) f32

    # In-kernel 0/1 selector: column g = one_hot(gt_class[g]); padded columns
    # carry class -1 and never match the iota -> exact zero contribution.
    onehot = (jax.lax.broadcasted_iota(jnp.int32, (c_pad, tg), 0)
              == cls_ref[...]).astype(jnp.bfloat16)                   # exact 0/1

    # Two exact bf16 MXU passes (hi/lo split).  Each output element has exactly
    # one non-zero product, so the result is f32-accurate without precision flags.
    d_hi = d.astype(jnp.bfloat16)
    d_lo = (d - d_hi.astype(jnp.float32)).astype(jnp.bfloat16)
    cost_class = (jnp.dot(d_hi, onehot, preferred_element_type=jnp.float32)
                  + jnp.dot(d_lo, onehot, preferred_element_type=jnp.float32))
    out_ref[...] = COEF_CLASS * cost_class

    # ---- narrow box components (TM,1) and (1,TG) before broadcasting ----
    pb = pb_ref[...]
    pcx, pcy, pw, ph = pb[:, 0:1], pb[:, 1:2], pb[:, 2:3], pb[:, 3:4]
    gt = gt_ref[...]
    gcx, gcy, gw, gh = gt[0:1, :], gt[1:2, :], gt[2:3, :], gt[3:4, :]

    # L1 cdist on cxcywh (broadcast (TM,1) x (1,TG)).
    cost_boxes = (jnp.abs(pcx - gcx) + jnp.abs(pcy - gcy)
                  + jnp.abs(pw - gw) + jnp.abs(ph - gh))
    out_ref[...] += COEF_BBOX * cost_boxes

    # Generalized IoU.  cxcywh -> xyxy hoisted to the narrow operands.
    px0 = pcx - 0.5 * pw
    px1 = pcx + 0.5 * pw
    py0 = pcy - 0.5 * ph
    py1 = pcy + 0.5 * ph
    gx0 = gcx - 0.5 * gw
    gx1 = gcx + 0.5 * gw
    gy0 = gcy - 0.5 * gh
    gy1 = gcy + 0.5 * gh
    p_area = pw * ph
    g_area = gw * gh

    iw = jnp.maximum(jnp.minimum(px1, gx1) - jnp.maximum(px0, gx0), 0.0)
    ih = jnp.maximum(jnp.minimum(py1, gy1) - jnp.maximum(py0, gy0), 0.0)
    inter = iw * ih
    union = p_area + g_area - inter
    ew = jnp.maximum(px1, gx1) - jnp.minimum(px0, gx0)
    eh = jnp.maximum(py1, gy1) - jnp.minimum(py0, gy0)
    e_area = ew * eh

    # Divides replaced by EUP approx reciprocals (free slot vs the VALU-bound
    # elementwise phase); cost_giou = -(iou - (e_area-union)/e_area)
    #                               = 1 - inter/union - union/e_area.
    inv_u = pl.reciprocal(union + EPS_DIV, approx=True)
    inv_e = pl.reciprocal(e_area + EPS_DIV, approx=True)
    cost_giou = 1.0 - inter * inv_u - union * inv_e
    out_ref[...] += COEF_GIOU * cost_giou


def compute_cost_blocks(pred_logits, pred_boxes, annotations):
    """Per-image block-diagonal cost: returns (bs, num_queries, G_pad) float32.

    Column g of image b is gt box g of that image (G_pad >= max image size,
    padded columns are garbage-but-finite and are sliced away by the caller).
    """
    bs, nq, c = pred_logits.shape
    sizes = [int(a["boxes"].shape[0]) for a in annotations]
    gmax = max(sizes) if sizes else 0
    if gmax == 0:
        return jnp.zeros((bs, nq, 0), jnp.float32)

    # Tile / pad sizes (lane-dense last dims, multiples of (8, 128)).
    tm = min(TM_MAX, _round_up(nq, 8))
    nq_pad = _round_up(nq, tm)
    c_pad = _round_up(c, 128)
    g128 = _round_up(gmax, 128)
    tg = min(TG_MAX, g128)
    g_pad = _round_up(g128, tg)

    # Pred side, padded once (padded rows are finite and never consumed).
    logits = pred_logits.astype(jnp.float32)
    pb = pred_boxes.astype(jnp.float32)
    if nq_pad > nq or c_pad > c:
        logits = jnp.pad(logits, ((0, 0), (0, nq_pad - nq), (0, c_pad - c)))
    if nq_pad > nq:
        pb = jnp.pad(pb, ((0, 0), (0, nq_pad - nq), (0, 0)), constant_values=0.25)

    # Per-image gt packing on host (tiny arrays): class -1 and a dummy *valid*
    # box on padded columns keep all math finite and the one-hot column zero.
    dummy_box = np.array([0.5, 0.5, 0.1, 0.1], np.float32)
    cls_rows, box_rows = [], []
    for a in annotations:
        sz = int(a["boxes"].shape[0])
        cls = np.full((g_pad,), -1, np.int32)
        boxes = np.broadcast_to(dummy_box, (g_pad, 4)).copy()
        if sz:
            cls[:sz] = np.asarray(jax.device_get(a["labels"])).astype(np.int32)
            boxes[:sz] = np.asarray(jax.device_get(a["boxes"]), np.float32)
        cls_rows.append(cls)
        box_rows.append(boxes.T)                      # (4, g_pad)
    gt_class_img = jnp.asarray(np.stack(cls_rows))[:, None, :]   # (bs, 1, g_pad) int32
    gt_boxes_img = jnp.asarray(np.stack(box_rows))               # (bs, 4, g_pad) f32

    cost_pad = pl.pallas_call(
        _cost_kernel,
        out_shape=jax.ShapeDtypeStruct((bs, nq_pad, g_pad), jnp.float32),
        grid=(bs, nq_pad // tm, g_pad // tg),
        in_specs=[
            pl.BlockSpec((None, tm, c_pad), lambda b, i, j: (b, i, 0)),
            pl.BlockSpec((None, tm, 4), lambda b, i, j: (b, i, 0)),
            pl.BlockSpec((None, 1, tg), lambda b, i, j: (b, 0, j)),
            pl.BlockSpec((None, 4, tg), lambda b, i, j: (b, 0, j)),
        ],
        out_specs=pl.BlockSpec((None, tm, tg), lambda b, i, j: (b, i, j)),
        compiler_params=pltpu.CompilerParams(
            # All grid points are independent; gt axis innermost so the logits
            # block is DMA'd once per (image, row-tile).
            dimension_semantics=("parallel", "parallel", "arbitrary"),
            vmem_limit_bytes=32 * 1024 * 1024,
        ),
    )(logits, pb, gt_class_img, gt_boxes_img)

    return cost_pad[:, :nq, :]


def _linear_sum_assignment(cost):
    """O(n^3) shortest-augmenting-path Hungarian, numpy-vectorized inner sweep."""
    c = np.asarray(cost, dtype=np.float64)
    nr, nc = c.shape
    if nr == 0 or nc == 0:
        return np.zeros(0, np.int64), np.zeros(0, np.int64)
    transposed = False
    if nc > nr:
        c = c.T
        nr, nc = c.shape
        transposed = True
    INF = np.inf
    u = np.zeros(nc + 1, dtype=np.float64)
    v = np.zeros(nr + 1, dtype=np.float64)
    p = np.zeros(nr + 1, dtype=np.int64)   # p[j] = column (1-based) matched to row j
    way = np.zeros(nr + 1, dtype=np.int64)
    for i in range(1, nc + 1):
        p[0] = i
        j0 = 0
        minv = np.full(nr + 1, INF, dtype=np.float64)
        used = np.zeros(nr + 1, dtype=bool)
        while True:
            used[j0] = True
            i0 = p[j0]
            # Vectorized relaxation over all free rows.
            free = ~used[1:]
            cur = c[:, i0 - 1] - u[i0] - v[1:]
            upd = free & (cur < minv[1:])
            if upd.any():
                minv[1:][upd] = cur[upd]
                way[1:][upd] = j0
            masked = np.where(free, minv[1:], INF)
            j1 = int(np.argmin(masked)) + 1
            delta = float(masked[j1 - 1])
            # Dual update (p values over the used set are distinct columns).
            u[p[used]] += delta
            v[used] -= delta
            minv[~used] -= delta
            j0 = j1
            if p[j0] == 0:
                break
        while j0 != 0:
            j1 = way[j0]
            p[j0] = p[j1]
            j0 = j1
    rows, cols = [], []
    for j in range(1, nr + 1):
        if p[j] != 0:
            rows.append(j - 1)
            cols.append(p[j] - 1)
    row_ind = np.asarray(rows, dtype=np.int64)
    col_ind = np.asarray(cols, dtype=np.int64)
    if transposed:
        row_ind, col_ind = col_ind, row_ind
        order = np.argsort(row_ind)
        row_ind, col_ind = row_ind[order], col_ind[order]
    return row_ind, col_ind


def hungarian_matcher(pred_logits, pred_boxes, annotations):
    """JAX/Pallas port of HungarianMatcher.forward."""
    bs = pred_logits.shape[0]
    sizes = [int(a["boxes"].shape[0]) for a in annotations]

    cost = compute_cost_blocks(pred_logits, pred_boxes, annotations)
    jax.block_until_ready(cost)
    cost_np = np.asarray(jax.device_get(cost))   # (bs, nq, G_pad) — only the block diagonal

    # TODO(synk): the per-image assignment is inherently sequential host-side
    # control flow; it runs in numpy (vectorized inner sweep) on the TPU-computed cost.
    indices = []
    for i in range(bs):
        block = cost_np[i, :, :sizes[i]]
        indices.append(_linear_sum_assignment(block))
    return [(np.asarray(r, np.int64), np.asarray(c, np.int64)) for r, c in indices]


def _reference_cost(pred_logits, pred_boxes, gt_class, gt_boxes):
    """Plain-numpy reference of one image's cost block (mirrors the torch code)."""
    logits = np.asarray(pred_logits, np.float64).reshape(-1, np.shape(pred_logits)[-1])
    p = 1.0 / (1.0 + np.exp(-logits))
    pb = np.asarray(pred_boxes, np.float64).reshape(-1, 4)
    gb = np.asarray(gt_boxes, np.float64)
    gc = np.asarray(gt_class)

    neg = (1 - ALPHA) * p ** GAMMA * -np.log(1 - p + EPS)
    pos = ALPHA * (1 - p) ** GAMMA * -np.log(p + EPS)
    cost_class = pos[:, gc] - neg[:, gc]
    cost_boxes = np.abs(pb[:, None, :] - gb[None, :, :]).sum(-1)

    def to_xyxy(b):
        return np.stack([b[:, 0] - b[:, 2] / 2, b[:, 1] - b[:, 3] / 2,
                         b[:, 0] + b[:, 2] / 2, b[:, 1] + b[:, 3] / 2], -1)

    pxy, gxy = to_xyxy(pb), to_xyxy(gb)
    pa = (pxy[:, 2] - pxy[:, 0]) * (pxy[:, 3] - pxy[:, 1])
    ga = (gxy[:, 2] - gxy[:, 0]) * (gxy[:, 3] - gxy[:, 1])
    lt = np.maximum(pxy[:, None, :2], gxy[None, :, :2])
    rb = np.minimum(pxy[:, None, 2:], gxy[None, :, 2:])
    wh = np.clip(rb - lt, 0, None)
    inter = wh[..., 0] * wh[..., 1]
    union = pa[:, None] + ga[None, :] - inter
    iou = inter / union
    elt = np.minimum(pxy[:, None, :2], gxy[None, :, :2])
    erb = np.maximum(pxy[:, None, 2:], gxy[None, :, 2:])
    ewh = np.clip(erb - elt, 0, None)
    earea = ewh[..., 0] * ewh[..., 1]
    giou = iou - (earea - union) / earea
    return COEF_BBOX * cost_boxes + COEF_CLASS * cost_class + COEF_GIOU * (-giou)


if __name__ == "__main__":
    key = jax.random.PRNGKey(0)
    bs, num_queries, num_classes = 2, 8, 4
    k1, k2, k3, k4 = jax.random.split(key, 4)

    pred_logits = jax.random.normal(k1, (bs, num_queries, num_classes), jnp.float32)
    # cxcywh in (0,1), strictly positive w/h
    pred_boxes = jax.nn.sigmoid(jax.random.normal(k2, (bs, num_queries, 4), jnp.float32)) * 0.8 + 0.05

    sizes = [3, 2]
    annotations = []
    for i, sz in enumerate(sizes):
        kb, kl = jax.random.split(jax.random.fold_in(k3, i))
        centers = jax.random.uniform(kb, (sz, 2), minval=0.2, maxval=0.8)
        whs = jax.random.uniform(jax.random.fold_in(kb, 1), (sz, 2), minval=0.05, maxval=0.3)
        annotations.append({
            "labels": jax.random.randint(kl, (sz,), 0, num_classes, dtype=jnp.int32),
            "boxes": jnp.concatenate([centers, whs], axis=-1).astype(jnp.float32),
        })

    # Run the matcher (Pallas kernel computes the per-image cost blocks).
    indices = hungarian_matcher(pred_logits, pred_boxes, annotations)
    assert len(indices) == bs and all(len(r) == s for (r, _), s in zip(indices, sizes))

    # Cross-check the kernel cost blocks against a plain-numpy reference
    # (tolerance loosened slightly for the EUP approx reciprocals / bf16 splits).
    cost_blocks = compute_cost_blocks(pred_logits, pred_boxes, annotations)
    jax.block_until_ready(cost_blocks)
    cost_np = np.asarray(jax.device_get(cost_blocks))
    for i, sz in enumerate(sizes):
        ref = _reference_cost(pred_logits[i], pred_boxes[i],
                              annotations[i]["labels"], annotations[i]["boxes"])
        assert np.allclose(cost_np[i, :, :sz], ref, rtol=2e-2, atol=2e-2), "cost mismatch"

    # Cross-check the O(n^3) Hungarian solver against brute force on the demo sizes.
    for i, sz in enumerate(sizes):
        block = cost_np[i, :, :sz].astype(np.float64)
        r, c = indices[i]
        got = block[r, c].sum()
        best = min(block[list(perm), np.arange(sz)].sum()
                   for perm in itertools.permutations(range(num_queries), sz))
        assert abs(got - best) < 1e-6, "assignment not optimal"

    print("KERNEL_OK")
</pallas_src>

<mosaic_0001>
module attributes {stable_mosaic.version = 11 : i64} {
  func.func @_cost_kernel(%arg0: i32, %arg1: i32, %arg2: i32, %arg3: memref<1x8x128xf32, #tpu.memory_space<vmem>>, %arg4: memref<1x8x4xf32, #tpu.memory_space<vmem>>, %arg5: memref<1x1x128xi32, #tpu.memory_space<vmem>>, %arg6: memref<1x4x128xf32, #tpu.memory_space<vmem>>, %arg7: memref<1x8x128xf32, #tpu.memory_space<vmem>>) attributes {dimension_semantics = [#tpu.dimension_semantics<parallel>, #tpu.dimension_semantics<parallel>, #tpu.dimension_semantics<arbitrary>], iteration_bounds = array<i64: 2, 1, 1>, scalar_prefetch = 0 : i64, scratch_operands = 0 : i64, tpu.core_type = #tpu.core_type<tc>, window_params = [{transform_indices = @transform_0, window_bounds = array<i64: 1, 8, 128>}, {transform_indices = @transform_1, window_bounds = array<i64: 1, 8, 4>}, {transform_indices = @transform_2, window_bounds = array<i64: 1, 1, 128>}, {transform_indices = @transform_3, window_bounds = array<i64: 1, 4, 128>}, {transform_indices = @transform_4, window_bounds = array<i64: 1, 8, 128>}]} {
    %c0 = arith.constant 0 : index
    %c0_0 = arith.constant 0 : index
    %c0_1 = arith.constant 0 : index
    %0 = vector.load %arg3[%c0, %c0_0, %c0_1] : memref<1x8x128xf32, #tpu.memory_space<vmem>>, vector<1x8x128xf32>
    %1 = vector.shape_cast %0 : vector<1x8x128xf32> to vector<8x128xf32>
    %2 = arith.negf %1 : vector<8x128xf32>
    %3 = math.exp %2 : vector<8x128xf32>
    %cst = arith.constant 1.000000e+00 : f32
    %4 = vector.broadcast %cst : f32 to vector<8x128xf32>
    %5 = arith.addf %4, %3 : vector<8x128xf32>
    %6 = arith.divf %4, %5 : vector<8x128xf32>
    %7 = arith.mulf %6, %6 : vector<8x128xf32>
    %cst_2 = arith.constant 7.500000e-01 : f32
    %8 = vector.broadcast %cst_2 : f32 to vector<8x128xf32>
    %9 = arith.mulf %8, %7 : vector<8x128xf32>
    %cst_3 = arith.constant 1.000000e+00 : f32
    %10 = vector.broadcast %cst_3 : f32 to vector<8x128xf32>
    %11 = arith.subf %10, %6 : vector<8x128xf32>
    %cst_4 = arith.constant 9.99999993E-9 : f32
    %12 = vector.broadcast %cst_4 : f32 to vector<8x128xf32>
    %13 = arith.addf %11, %12 : vector<8x128xf32>
    %14 = math.log %13 : vector<8x128xf32>
    %cst_5 = arith.constant 0.000000e+00 : f32
    %15 = vector.broadcast %cst_5 : f32 to vector<8x128xf32>
    %16 = arith.subf %15, %14 : vector<8x128xf32>
    %17 = arith.mulf %9, %16 : vector<8x128xf32>
    %cst_6 = arith.constant 1.000000e+00 : f32
    %18 = vector.broadcast %cst_6 : f32 to vector<8x128xf32>
    %19 = arith.subf %18, %6 : vector<8x128xf32>
    %20 = arith.mulf %19, %19 : vector<8x128xf32>
    %cst_7 = arith.constant 2.500000e-01 : f32
    %21 = vector.broadcast %cst_7 : f32 to vector<8x128xf32>
    %22 = arith.mulf %21, %20 : vector<8x128xf32>
    %cst_8 = arith.constant 9.99999993E-9 : f32
    %23 = vector.broadcast %cst_8 : f32 to vector<8x128xf32>
    %24 = arith.addf %6, %23 : vector<8x128xf32>
    %25 = math.log %24 : vector<8x128xf32>
    %cst_9 = arith.constant 0.000000e+00 : f32
    %26 = vector.broadcast %cst_9 : f32 to vector<8x128xf32>
    %27 = arith.subf %26, %25 : vector<8x128xf32>
    %28 = arith.mulf %22, %27 : vector<8x128xf32>
    %29 = arith.subf %28, %17 : vector<8x128xf32>
    %30 = tpu.iota {dimensions = array<i32: 0>} : vector<128x128xi32>
    %c0_10 = arith.constant 0 : index
    %c0_11 = arith.constant 0 : index
    %c0_12 = arith.constant 0 : index
    %31 = vector.load %arg5[%c0_10, %c0_11, %c0_12] : memref<1x1x128xi32, #tpu.memory_space<vmem>>, vector<1x1x128xi32>
    %32 = vector.shape_cast %31 : vector<1x1x128xi32> to vector<1x128xi32>
    %33 = vector.broadcast %32 : vector<1x128xi32> to vector<128x128xi32>
    %34 = arith.cmpi eq, %30, %33 : vector<128x128xi32>
    %35 = arith.extui %34 : vector<128x128xi1> to vector<128x128xi32>
    %36 = arith.sitofp %35 : vector<128x128xi32> to vector<128x128xf32>
    %37 = arith.truncf %36 : vector<128x128xf32> to vector<128x128xbf16>
    %38 = arith.truncf %29 : vector<8x128xf32> to vector<8x128xbf16>
    %39 = arith.extf %38 : vector<8x128xbf16> to vector<8x128xf32>
    %40 = arith.subf %29, %39 : vector<8x128xf32>
    %41 = arith.truncf %40 : vector<8x128xf32> to vector<8x128xbf16>
    %cst_13 = arith.constant dense<0.000000e+00> : vector<8x128xf32>
    %42 = tpu.matmul %38, %37, %cst_13 {dimension_numbers = #tpu.dot_dimension_numbers<[1], [0], [0], [1], [0, 0, 1, 1], [], []>} : vector<8x128xbf16>, vector<128x128xbf16>, vector<8x128xf32> -> vector<8x128xf32>
    %cst_14 = arith.constant dense<0.000000e+00> : vector<8x128xf32>
    %43 = tpu.matmul %41, %37, %cst_14 {dimension_numbers = #tpu.dot_dimension_numbers<[1], [0], [0], [1], [0, 0, 1, 1], [], []>} : vector<8x128xbf16>, vector<128x128xbf16>, vector<8x128xf32> -> vector<8x128xf32>
    %44 = arith.addf %42, %43 : vector<8x128xf32>
    %cst_15 = arith.constant 2.000000e+00 : f32
    %45 = vector.broadcast %cst_15 : f32 to vector<8x128xf32>
    %46 = arith.mulf %45, %44 : vector<8x128xf32>
    %c0_16 = arith.constant 0 : index
    %c0_17 = arith.constant 0 : index
    %c0_18 = arith.constant 0 : index
    %47 = vector.load %arg7[%c0_16, %c0_17, %c0_18] : memref<1x8x128xf32, #tpu.memory_space<vmem>>, vector<1x8x128xf32>
    %48 = vector.shape_cast %47 : vector<1x8x128xf32> to vector<8x128xf32>
    %49 = vector.shape_cast %46 : vector<8x128xf32> to vector<1x8x128xf32>
    tpu.vector_store %arg7[%c0_16, %c0_17, %c0_18], %49 {strides = array<i32>} : memref<1x8x128xf32, #tpu.memory_space<vmem>>, vector<1x8x128xf32>,
    %c0_19 = arith.constant 0 : index
    %c0_20 = arith.constant 0 : index
    %c0_21 = arith.constant 0 : index
    %50 = vector.load %arg4[%c0_19, %c0_20, %c0_21] : memref<1x8x4xf32, #tpu.memory_space<vmem>>, vector<1x8x4xf32>
    %51 = vector.shape_cast %50 : vector<1x8x4xf32> to vector<8x4xf32>
    %52 = vector.extract_strided_slice %51 {offsets = [0, 0], sizes = [8, 1], strides = [1, 1]} : vector<8x4xf32> to vector<8x1xf32>
    %53 = vector.extract_strided_slice %51 {offsets = [0, 1], sizes = [8, 1], strides = [1, 1]} : vector<8x4xf32> to vector<8x1xf32>
    %54 = vector.extract_strided_slice %51 {offsets = [0, 2], sizes = [8, 1], strides = [1, 1]} : vector<8x4xf32> to vector<8x1xf32>
    %55 = vector.extract_strided_slice %51 {offsets = [0, 3], sizes = [8, 1], strides = [1, 1]} : vector<8x4xf32> to vector<8x1xf32>
    %c0_22 = arith.constant 0 : index
    %c0_23 = arith.constant 0 : index
    %c0_24 = arith.constant 0 : index
    %56 = vector.load %arg6[%c0_22, %c0_23, %c0_24] : memref<1x4x128xf32, #tpu.memory_space<vmem>>, vector<1x4x128xf32>
    %57 = vector.shape_cast %56 : vector<1x4x128xf32> to vector<4x128xf32>
    %58 = vector.extract_strided_slice %57 {offsets = [0, 0], sizes = [1, 128], strides = [1, 1]} : vector<4x128xf32> to vector<1x128xf32>
    %59 = vector.extract_strided_slice %57 {offsets = [1, 0], sizes = [1, 128], strides = [1, 1]} : vector<4x128xf32> to vector<1x128xf32>
    %60 = vector.extract_strided_slice %57 {offsets = [2, 0], sizes = [1, 128], strides = [1, 1]} : vector<4x128xf32> to vector<1x128xf32>
    %61 = vector.extract_strided_slice %57 {offsets = [3, 0], sizes = [1, 128], strides = [1, 1]} : vector<4x128xf32> to vector<1x128xf32>
    %62 = vector.broadcast %52 : vector<8x1xf32> to vector<8x128xf32>
    %63 = vector.broadcast %58 : vector<1x128xf32> to vector<8x128xf32>
    %64 = arith.subf %62, %63 : vector<8x128xf32>
    %65 = math.absf %64 : vector<8x128xf32>
    %66 = vector.broadcast %53 : vector<8x1xf32> to vector<8x128xf32>
    %67 = vector.broadcast %59 : vector<1x128xf32> to vector<8x128xf32>
    %68 = arith.subf %66, %67 : vector<8x128xf32>
    %69 = math.absf %68 : vector<8x128xf32>
    %70 = arith.addf %65, %69 : vector<8x128xf32>
    %71 = vector.broadcast %54 : vector<8x1xf32> to vector<8x128xf32>
    %72 = vector.broadcast %60 : vector<1x128xf32> to vector<8x128xf32>
    %73 = arith.subf %71, %72 : vector<8x128xf32>
    %74 = math.absf %73 : vector<8x128xf32>
    %75 = arith.addf %70, %74 : vector<8x128xf32>
    %76 = vector.broadcast %55 : vector<8x1xf32> to vector<8x128xf32>
    %77 = vector.broadcast %61 : vector<1x128xf32> to vector<8x128xf32>
    %78 = arith.subf %76, %77 : vector<8x128xf32>
    %79 = math.absf %78 : vector<8x128xf32>
    %80 = arith.addf %75, %79 : vector<8x128xf32>
    %c0_25 = arith.constant 0 : index
    %c0_26 = arith.constant 0 : index
    %c0_27 = arith.constant 0 : index
    %81 = vector.load %arg7[%c0_25, %c0_26, %c0_27] : memref<1x8x128xf32, #tpu.memory_space<vmem>>, vector<1x8x128xf32>
    %82 = vector.shape_cast %81 : vector<1x8x128xf32> to vector<8x128xf32>
    %cst_28 = arith.constant 5.000000e+00 : f32
    %83 = vector.broadcast %cst_28 : f32 to vector<8x128xf32>
    %84 = arith.mulf %83, %80 : vector<8x128xf32>
    %85 = arith.addf %82, %84 : vector<8x128xf32>
    %c0_29 = arith.constant 0 : index
    %c0_30 = arith.constant 0 : index
    %c0_31 = arith.constant 0 : index
    %86 = vector.load %arg7[%c0_29, %c0_30, %c0_31] : memref<1x8x128xf32, #tpu.memory_space<vmem>>, vector<1x8x128xf32>
    %87 = vector.shape_cast %86 : vector<1x8x128xf32> to vector<8x128xf32>
    %88 = vector.shape_cast %85 : vector<8x128xf32> to vector<1x8x128xf32>
    tpu.vector_store %arg7[%c0_29, %c0_30, %c0_31], %88 {strides = array<i32>} : memref<1x8x128xf32, #tpu.memory_space<vmem>>, vector<1x8x128xf32>,
    %cst_32 = arith.constant 5.000000e-01 : f32
    %89 = vector.broadcast %cst_32 : f32 to vector<8x1xf32>
    %90 = arith.mulf %89, %54 : vector<8x1xf32>
    %91 = arith.subf %52, %90 : vector<8x1xf32>
    %cst_33 = arith.constant 5.000000e-01 : f32
    %92 = vector.broadcast %cst_33 : f32 to vector<8x1xf32>
    %93 = arith.mulf %92, %54 : vector<8x1xf32>
    %94 = arith.addf %52, %93 : vector<8x1xf32>
    %cst_34 = arith.constant 5.000000e-01 : f32
    %95 = vector.broadcast %cst_34 : f32 to vector<8x1xf32>
    %96 = arith.mulf %95, %55 : vector<8x1xf32>
    %97 = arith.subf %53, %96 : vector<8x1xf32>
    %cst_35 = arith.constant 5.000000e-01 : f32
    %98 = vector.broadcast %cst_35 : f32 to vector<8x1xf32>
    %99 = arith.mulf %98, %55 : vector<8x1xf32>
    %100 = arith.addf %53, %99 : vector<8x1xf32>
    %cst_36 = arith.constant 5.000000e-01 : f32
    %101 = vector.broadcast %cst_36 : f32 to vector<1x128xf32>
    %102 = arith.mulf %101, %60 : vector<1x128xf32>
    %103 = arith.subf %58, %102 : vector<1x128xf32>
    %cst_37 = arith.constant 5.000000e-01 : f32
    %104 = vector.broadcast %cst_37 : f32 to vector<1x128xf32>
    %105 = arith.mulf %104, %60 : vector<1x128xf32>
    %106 = arith.addf %58, %105 : vector<1x128xf32>
    %cst_38 = arith.constant 5.000000e-01 : f32
    %107 = vector.broadcast %cst_38 : f32 to vector<1x128xf32>
    %108 = arith.mulf %107, %61 : vector<1x128xf32>
    %109 = arith.subf %59, %108 : vector<1x128xf32>
    %cst_39 = arith.constant 5.000000e-01 : f32
    %110 = vector.broadcast %cst_39 : f32 to vector<1x128xf32>
    %111 = arith.mulf %110, %61 : vector<1x128xf32>
    %112 = arith.addf %59, %111 : vector<1x128xf32>
    %113 = arith.mulf %54, %55 : vector<8x1xf32>
    %114 = arith.mulf %60, %61 : vector<1x128xf32>
    %115 = vector.broadcast %94 : vector<8x1xf32> to vector<8x128xf32>
    %116 = vector.broadcast %106 : vector<1x128xf32> to vector<8x128xf32>
    %117 = arith.minimumf %115, %116 : vector<8x128xf32>
    %118 = vector.broadcast %91 : vector<8x1xf32> to vector<8x128xf32>
    %119 = vector.broadcast %103 : vector<1x128xf32> to vector<8x128xf32>
    %120 = arith.maximumf %118, %119 : vector<8x128xf32>
    %121 = arith.subf %117, %120 : vector<8x128xf32>
    %cst_40 = arith.constant 0.000000e+00 : f32
    %122 = vector.broadcast %cst_40 : f32 to vector<8x128xf32>
    %123 = arith.maximumf %121, %122 : vector<8x128xf32>
    %124 = vector.broadcast %100 : vector<8x1xf32> to vector<8x128xf32>
    %125 = vector.broadcast %112 : vector<1x128xf32> to vector<8x128xf32>
    %126 = arith.minimumf %124, %125 : vector<8x128xf32>
    %127 = vector.broadcast %97 : vector<8x1xf32> to vector<8x128xf32>
    %128 = vector.broadcast %109 : vector<1x128xf32> to vector<8x128xf32>
    %129 = arith.maximumf %127, %128 : vector<8x128xf32>
    %130 = arith.subf %126, %129 : vector<8x128xf32>
    %cst_41 = arith.constant 0.000000e+00 : f32
    %131 = vector.broadcast %cst_41 : f32 to vector<8x128xf32>
    %132 = arith.maximumf %130, %131 : vector<8x128xf32>
    %133 = arith.mulf %123, %132 : vector<8x128xf32>
    %134 = vector.broadcast %113 : vector<8x1xf32> to vector<8x128xf32>
    %135 = vector.broadcast %114 : vector<1x128xf32> to vector<8x128xf32>
    %136 = arith.addf %134, %135 : vector<8x128xf32>
    %137 = arith.subf %136, %133 : vector<8x128xf32>
    %138 = vector.broadcast %94 : vector<8x1xf32> to vector<8x128xf32>
    %139 = vector.broadcast %106 : vector<1x128xf32> to vector<8x128xf32>
    %140 = arith.maximumf %138, %139 : vector<8x128xf32>
    %141 = vector.broadcast %91 : vector<8x1xf32> to vector<8x128xf32>
    %142 = vector.broadcast %103 : vector<1x128xf32> to vector<8x128xf32>
    %143 = arith.minimumf %141, %142 : vector<8x128xf32>
    %144 = arith.subf %140, %143 : vector<8x128xf32>
    %145 = vector.broadcast %100 : vector<8x1xf32> to vector<8x128xf32>
    %146 = vector.broadcast %112 : vector<1x128xf32> to vector<8x128xf32>
    %147 = arith.maximumf %145, %146 : vector<8x128xf32>
    %148 = vector.broadcast %97 : vector<8x1xf32> to vector<8x128xf32>
    %149 = vector.broadcast %109 : vector<1x128xf32> to vector<8x128xf32>
    %150 = arith.minimumf %148, %149 : vector<8x128xf32>
    %151 = arith.subf %147, %150 : vector<8x128xf32>
    %152 = arith.mulf %144, %151 : vector<8x128xf32>
    %cst_42 = arith.constant 9.99999993E-9 : f32
    %153 = vector.broadcast %cst_42 : f32 to vector<8x128xf32>
    %154 = arith.addf %137, %153 : vector<8x128xf32>
    %155 = tpu.reciprocal %154 {approx = true} : vector<8x128xf32> -> vector<8x128xf32>
    %cst_43 = arith.constant 9.99999993E-9 : f32
    %156 = vector.broadcast %cst_43 : f32 to vector<8x128xf32>
    %157 = arith.addf %152, %156 : vector<8x128xf32>
    %158 = tpu.reciprocal %157 {approx = true} : vector<8x128xf32> -> vector<8x128xf32>
    %159 = arith.mulf %133, %155 : vector<8x128xf32>
    %cst_44 = arith.constant 1.000000e+00 : f32
    %160 = vector.broadcast %cst_44 : f32 to vector<8x128xf32>
    %161 = arith.subf %160, %159 : vector<8x128xf32>
    %162 = arith.mulf %137, %158 : vector<8x128xf32>
    %163 = arith.subf %161, %162 : vector<8x128xf32>
    %c0_45 = arith.constant 0 : index
    %c0_46 = arith.constant 0 : index
    %c0_47 = arith.constant 0 : index
    %164 = vector.load %arg7[%c0_45, %c0_46, %c0_47] : memref<1x8x128xf32, #tpu.memory_space<vmem>>, vector<1x8x128xf32>
    %165 = vector.shape_cast %164 : vector<1x8x128xf32> to vector<8x128xf32>
    %cst_48 = arith.constant 2.000000e+00 : f32
    %166 = vector.broadcast %cst_48 : f32 to vector<8x128xf32>
    %167 = arith.mulf %166, %163 : vector<8x128xf32>
    %168 = arith.addf %165, %167 : vector<8x128xf32>
    %c0_49 = arith.constant 0 : index
    %c0_50 = arith.constant 0 : index
    %c0_51 = arith.constant 0 : index
    %169 = vector.load %arg7[%c0_49, %c0_50, %c0_51] : memref<1x8x128xf32, #tpu.memory_space<vmem>>, vector<1x8x128xf32>
    %170 = vector.shape_cast %169 : vector<1x8x128xf32> to vector<8x128xf32>
    %171 = vector.shape_cast %168 : vector<8x128xf32> to vector<1x8x128xf32>
    tpu.vector_store %arg7[%c0_49, %c0_50, %c0_51], %171 {strides = array<i32>} : memref<1x8x128xf32, #tpu.memory_space<vmem>>, vector<1x8x128xf32>,
    return
  }
  func.func @transform_0(%arg0: i32, %arg1: i32, %arg2: i32) -> (i32, i32, i32) {
    %c0_i32 = arith.constant 0 : i32
    %c0_i32_0 = arith.constant 0 : i32
    return %arg0, %arg1, %c0_i32 : i32, i32, i32
  }
  func.func @transform_1(%arg0: i32, %arg1: i32, %arg2: i32) -> (i32, i32, i32) {
    %c0_i32 = arith.constant 0 : i32
    %c0_i32_0 = arith.constant 0 : i32
    return %arg0, %arg1, %c0_i32 : i32, i32, i32
  }
  func.func @transform_2(%arg0: i32, %arg1: i32, %arg2: i32) -> (i32, i32, i32) {
    %c0_i32 = arith.constant 0 : i32
    %c0_i32_0 = arith.constant 0 : i32
    return %arg0, %c0_i32, %arg2 : i32, i32, i32
  }
  func.func @transform_3(%arg0: i32, %arg1: i32, %arg2: i32) -> (i32, i32, i32) {
    %c0_i32 = arith.constant 0 : i32
    %c0_i32_0 = arith.constant 0 : i32
    return %arg0, %c0_i32, %arg2 : i32, i32, i32
  }
  func.func @transform_4(%arg0: i32, %arg1: i32, %arg2: i32) -> (i32, i32, i32) {
    %c0_i32 = arith.constant 0 : i32
    return %arg0, %arg1, %arg2 : i32, i32, i32
  }
}

</mosaic_0001>

<bundles_post_ra>
// kernel: tpu_custom_call.1
= control target key start
LH: loop header
LB: loop body
LE: loop exit
PB: predicated region body
PF: predicated region fallthrough
CT: control target
= control target key end

     0   :  { %9 = vsyncpa [#allocation3], 0  ;;  %s1311_s0 = inlined_call_operand.vmem [shape: f32[2,8,128], index: 0, kind: input, shape index: {}]   ;;  %s1312_s1 = inlined_call_operand.vmem [shape: f32[2,8,4], index: 1, kind: input, shape index: {}]   ;;  %s1313_s2 = inlined_call_operand.vmem [shape: s32[2,1,128], index: 2, kind: input, shape index: {}]   ;;  %s1314_s3 = inlined_call_operand.vmem [shape: f32[2,4,128], index: 3, kind: input, shape index: {}]   ;;  %s1315_s4 = inlined_call_operand.hbm [shape: f32[2,8,128], index: 4, kind: output, shape index: {}]  }
   0x1   :  { %11 = vsyncpa [#allocation3 + $0x1], 0  ;;  %s1095_s15 = smov 0   ;;  %s1097_s16 = smov 0  }
   0x2   :  { %s1099_s17 = smov 0   ;;  %s1101_s18 = smov 0  }
   0x3   :  { %s1103_s19 = smov 0   ;;  %s1105_s20 = smov 0  }
   0x4 LB: > { %s773_s21 = sadd.s32 4294967295, %s1058_s20   ;;  %s774_s22 = sadd.s32 4294967294, %s1058_s20   ;;  %s1058_s20 = sphi %s1105_s20, %s17_s20   ;;  %s1054_s19 = sphi %s1103_s19, %s1322_s19   ;;  %s1050_s18 = sphi %s1101_s18, %s1321_s18   ;;  %s1046_s17 = sphi %s1099_s17, %s1320_s17   ;;  %s1042_s16 = sphi %s1097_s16, %s1319_s16   ;;  %s1038_s15 = sphi %s1095_s15, %s1318_s15  }
   0x5   : > { %s36_s23 = sadd.s32 1, %s1054_s19  ;;  %s159_s24 = sadd.s32 1, %s1046_s17 }
   0x6   : > { %p38_p0 = scmp.ge.s32.totalorder %s36_s23, 2  ;;  %p169_p1 = scmp.ne.s32.totalorder %s1046_s17, %s1042_s16 }
   0x7   : > { %p170_p2 = scmp.eq.s32.totalorder %s773_s21, 1  ;;  %p175_p3 = scmp.ne.s32.totalorder %s1042_s16, %s1038_s15 }
   0x8   : > { %s1324_s23 = smov (%p38_p0, %s36_s23), 0  ;;  %p176_p5 = scmp.eq.s32.totalorder %s774_s22, 1 }
   0x9   : > { %p1135_p4 = por %p170_p2, %p169_p1  ;;  %s152_s26 = ssub.s32 %s1054_s19, %s1324_s23 }
   0xa   : > { %p777_p6 = scmp.ge.s32.totalorder %s1058_s20, 1  ;;  %p157_p7 = scmp.eq.s32.totalorder %s152_s26, 0 }
   0xb   : > { %p1142_p8 = por %p176_p5, %p175_p3  ;;  %p233_p9 = scmp.lt.s32.totalorder %s1058_s20, 3 }
   0xc   : > { %s1148_s28 = scalar_select %p157_p7, %s1046_s17, %s159_s24  }
   0xd   : > { %p234_p10 = pnand %p777_p6, %p233_p9 }
   0xe   : > { %p281_p11 = scmp.lt.s32.totalorder (!%p234_p10), %s1050_s18, 1  ;;  %v332_v0 = vlaneseq (!%p234_p10)  ;;  %v1060_v1 = vmov (!%p234_p10), 0.0   ;;  %vm1061_vm0 = vmmov (!%p234_p10), 0   ;;  %v1062_v3 = vmov (!%p234_p10), 1   ;;  %s1065_s14 = smov (!%p234_p10), 126  }
   0xf   : > { %237 = sbr.rel (%p234_p10) target bundleno = 330 (0x14a), region = 36  ;;  %874 = vmatprep.subr.bf16.mxu0 (!%p234_p10), %v1060_v1  ;;  %854 = vmatprep.subr.bf16.mxu1 (!%p234_p10), %v1060_v1  ;;  %v1063_v4 = vmov (!%p234_p10), 0   ;;  %v1064_v15 = vmov (!%p234_p10), 1.0|1.0   ;;  %s1066_s21 = smov (!%p234_p10), 127   ;;  %v1067_v53 = vmov (!%p234_p10), 3  }
  0x10   : > { %v1156_v2 = vshrl.u32 (!%p234_p10), %v332_v0, 7  ;;  %890 = vmatprep.mubr.msk.bf16.mxu0 (!%p234_p10), %vm1061_vm0, %v1060_v1  ;;  %870 = vmatprep.mubr.msk.bf16.mxu1 (!%p234_p10), %vm1061_vm0, %v1060_v1  ;;  %v1068_v55 = vmov (!%p234_p10), 2   ;;  %s833_s6 = sshll.u32 (!%p234_p10), %s1050_s18, 7 }
  0x11   : > { %960 = vset.pattern.permute.xlu0 (!%p234_p10), %v1062_v3  ;;  %959 = vset.pattern.permute.xlu1 (!%p234_p10), %v1063_v4  ;;  %s1264_s11 = scalar_lea.hbm (!%p234_p10), %s1315_s4, %s833_s6 }
  0x12   : > { %v334_v5 = vadd.s32 (!%p234_p10), 8, %v1156_v2  ;;  %v335_v6 = vadd.s32 (!%p234_p10), 16, %v1156_v2  ;;  %v336_v7 = vadd.s32 (!%p234_p10), 24, %v1156_v2  ;;  %v337_v9 = vadd.s32 (!%p234_p10), 32, %v1156_v2 }
  0x13   : > { %v338_v10 = vadd.s32 (!%p234_p10), 40, %v1156_v2  ;;  %v339_v16 = vadd.s32 (!%p234_p10), 48, %v1156_v2  ;;  %v340_v17 = vadd.s32 (!%p234_p10), 56, %v1156_v2  ;;  %v341_v18 = vadd.s32 (!%p234_p10), 64, %v1156_v2 }
  0x14   : > { %v342_v19 = vadd.s32 (!%p234_p10), 72, %v1156_v2  ;;  %v343_v20 = vadd.s32 (!%p234_p10), 80, %v1156_v2  ;;  %v344_v21 = vadd.s32 (!%p234_p10), 88, %v1156_v2  ;;  %v345_v24 = vadd.s32 (!%p234_p10), 96, %v1156_v2 }
  0x15   : > { %v346_v25 = vadd.s32 (!%p234_p10), 104, %v1156_v2  ;;  %v347_v26 = vadd.s32 (!%p234_p10), 112, %v1156_v2  ;;  %v348_v27 = vadd.s32 (!%p234_p10), 120, %v1156_v2  ;;  %v505_v60 = vsub.s32 (!%p234_p10), 0, %v1156_v2 }
  0x16   : > { %s1154_s29 = scalar_select %p281_p11, %s1050_s18, 1  ;;  %v515_v63 = vsub.s32 1, %v1156_v2 }
  0x17   : > { %s1069_s18 = smov [#allocation2]  }
  0x18   : > { %s779_s30 = sshll.u32 %s1154_s29, 3  ;;  %s300_s7 = scalar_lea.vmem %s1313_s2, %s1154_s29 }
  0x19   : > { %s294_s10 = scalar_lea.vmem %s1312_s1, %s779_s30  ;;  %v1173_v8 = vld [vmem:[%s300_s7] ss:$0 sm:$0xff]  ;;  %s287_s13 = scalar_lea.vmem %s1311_s0, %s779_s30 }
  0x1a   : > { %v1180_v11 = vld [vmem:[%s294_s10] sm:$0xff]  ;;  %vm354_vm1 = vcmp.eq.s32.totalorder %v1156_v2, %v1173_v8  ;;  %vm355_vm2 = vcmp.eq.s32.totalorder %v334_v5, %v1173_v8  ;;  %vm356_vm3 = vcmp.eq.s32.totalorder %v335_v6, %v1173_v8  ;;  %vm357_vm4 = vcmp.eq.s32.totalorder %v336_v7, %v1173_v8  ;;  %s781_s22 = sshll.u32 %s1154_s29, 2  ;;  %s278_s29 = sand.u32 1, %s1042_s16  }
  0x1b   : > { %v309_v12 = vld [vmem:[%s287_s13] sm:$0xff]  ;;  %v546_v13 = vmul.f32 0.5, %v1180_v11  ;;  %vm800_vm5 = vmpackc.low %vm355_vm2, %vm354_vm1  ;;  %vm358_vm7 = vcmp.eq.s32.totalorder %v337_v9, %v1173_v8  ;;  %vm359_vm8 = vcmp.eq.s32.totalorder %v338_v10, %v1173_v8  ;;  %vm360_vm10 = vcmp.eq.s32.totalorder %v339_v16, %v1173_v8  ;;  %s307_s30 = scalar_lea.vmem %s1314_s3, %s781_s22  ;;  %s778_s5 = sshll.u32 %s278_s29, 3 }
  0x1c   : > { %v782_v14 = vmul.f32 -1.442695, %v309_v12  ;;  %875 = vmatpush3.bf16.msk.msra.mxu0 %vm800_vm5, %v1064_v15  ;;  %855 = vmatpush3.bf16.msk.msra.mxu1 %vm800_vm5, %v1064_v15  ;;  %vm802_vm6 = vmpackc.low %vm357_vm4, %vm356_vm3  ;;  %vm361_vm11 = vcmp.eq.s32.totalorder %v340_v17, %v1173_v8  ;;  %vm362_vm13 = vcmp.eq.s32.totalorder %v341_v18, %v1173_v8  ;;  %vm363_vm14 = vcmp.eq.s32.totalorder %v342_v19, %v1173_v8  ;;  %v497_v56 = vld [vmem:[%s307_s30] sm:$0xf]  ;;  %s280_s7 = scalar_lea.vmem [#allocation2], %s778_s5  ;;  %s641_s12 = scalar_lea.sflag [#allocation3], %s278_s29 }
  0x1d   : > { %548 = vrot.lane.b32.xlu0 %v546_v13, %s1065_s14  ;;  %876 = vmatprep.subr.bf16.mxu0 %v1060_v1  ;;  %vm804_vm9 = vmpackc.low %vm359_vm8, %vm358_vm7  ;;  %vm364_vm0 = vcmp.eq.s32.totalorder %v343_v20, %v1173_v8  ;;  %vm365_vm1 = vcmp.eq.s32.totalorder %v344_v21, %v1173_v8  ;;  %vm366_vm3 = vcmp.eq.s32.totalorder %v345_v24, %v1173_v8  ;;  %v553_v57 = vmul.f32 0.5, %v497_v56  ;;  %s656_s8 = sshll.u32 %s280_s7, 4  ;;  %s984_s14 = sshll.u32 %s1069_s18, 4  ;;  %s1266_s8 = int_to_ptr.vmem [resolvable:$true] %s656_s8  ;;  %s985_s14 = int_to_ptr.vmem [resolvable:$false] %s984_s14 }
  0x1e   : > { %968 = vpow2.f32 %v782_v14  ;;  %856 = vmatprep.subr.bf16.mxu1 %v1060_v1  ;;  %vm806_vm12 = vmpackc.low %vm361_vm11, %vm360_vm10  ;;  %vm367_vm4 = vcmp.eq.s32.totalorder %v346_v25, %v1173_v8  ;;  %vm369_vm7 = vcmp.eq.s32.totalorder %v348_v27, %v1173_v8  ;;  %v526_v9 = vsub.s32 2, %v1156_v2  ;;  %s980_s13 = scalar_lea.vmem %s1266_s8, 128  ;;  %p987_p1 = scmp.lt.s32.totalorder %s1266_s8, %s985_s14 }
  0x1f   : > { %vm808_vm15 = vmpackc.low %vm363_vm14, %vm362_vm13  ;;  %v555_v58 = vrot.slane %v553_v57, 2  ;;  %v506_v24 = vrot.slane %v497_v56, %v505_v60  ;;  %p981_p12 = scmp.ne.s32.totalorder %s1266_s8, %s980_s13 }
  0x20   : > { %877 = vmatpush3.bf16.msk.msra.mxu0 %vm802_vm6, %v1064_v15  ;;  %857 = vmatpush3.bf16.msk.msra.mxu1 %vm802_vm6, %v1064_v15  ;;  %vm810_vm2 = vmpackc.low %vm365_vm1, %vm364_vm0  ;;  %vm368_vm6 = vcmp.eq.s32.totalorder %v347_v26, %v1173_v8 }
  0x21   : > { %559 = vrot.lane.b32.xlu0 %v1180_v11, %s1066_s21  ;;  %878 = vmatprep.subr.bf16.mxu0 %v1060_v1  ;;  %vm812_vm5 = vmpackc.low %vm367_vm4, %vm366_vm3  ;;  %v557_v59 = vsub.f32 %v497_v56, %v555_v58  ;;  %v558_v61 = vadd.f32 %v555_v58, %v497_v56  ;;  %p982_p13 = pnand %p981_p12, %p1135_p4  ;;  %s986_s21 = scalar_lea.vmem %s985_s14, 256 }
  0x22   : > { %858 = vmatprep.subr.bf16.mxu1 %v1060_v1  ;;  %vm814_vm8 = vmpackc.low %vm369_vm7, %vm368_vm6  ;;  %p988_p2 = scmp.lt.s32.totalorder %s986_s21, %s980_s13 }
  0x23   : > { %v585_v0 = vrot.slane %v557_v59, %v505_v60  ;;  %v596_v5 = vrot.slane %v558_v61, %v515_v63  ;;  %v605_v8 = vrot.slane %v557_v59, %v515_v63  ;;  %p983_p0 = pneg %p982_p13 }
  0x24   : > { %879 = vmatpush3.bf16.msk.msra.mxu0 %vm804_vm9, %v1064_v15  ;;  %859 = vmatpush3.bf16.msk.msra.mxu1 %vm804_vm9, %v1064_v15  ;;  %p989_p3 = por %p988_p2, %p987_p1 }
  0x25   : > { %880 = vmatprep.subr.bf16.mxu0 %v1060_v1  ;;  %860 = vmatprep.subr.bf16.mxu1 %v1060_v1 }
  0x26   : > { %p990_p5 = pnand %p989_p3, %p983_p0 }
  0x28   : > { %v969_v22 = vpop.eup %968  ;;  %881 = vmatpush3.bf16.msk.msra.mxu0 %vm806_vm12, %v1064_v15  ;;  %861 = vmatpush3.bf16.msk.msra.mxu1 %vm806_vm12, %v1064_v15 }
  0x29   : > { %v313_v23 = vadd.f32 1.0, %v969_v22  ;;  %882 = vmatprep.subr.bf16.mxu0 %v1060_v1  ;;  %862 = vmatprep.subr.bf16.mxu1 %v1060_v1 }
  0x2b   : > { %970 = vrcp.f32 %v313_v23 }
  0x2c   : > { %883 = vmatpush3.bf16.msk.msra.mxu0 %vm808_vm15, %v1064_v15  ;;  %863 = vmatpush3.bf16.msk.msra.mxu1 %vm808_vm15, %v1064_v15 }
  0x2d   : > { %884 = vmatprep.subr.bf16.mxu0 %v1060_v1  ;;  %864 = vmatprep.subr.bf16.mxu1 %v1060_v1 }
  0x30   : > { %885 = vmatpush3.bf16.msk.msra.mxu0 %vm810_vm2, %v1064_v15  ;;  %865 = vmatpush3.bf16.msk.msra.mxu1 %vm810_vm2, %v1064_v15 }
  0x31   : > { %886 = vmatprep.subr.bf16.mxu0 %v1060_v1  ;;  %866 = vmatprep.subr.bf16.mxu1 %v1060_v1 }
  0x34   : > { %887 = vmatpush3.bf16.msk.msra.mxu0 %vm812_vm5, %v1064_v15  ;;  %867 = vmatpush3.bf16.msk.msra.mxu1 %vm812_vm5, %v1064_v15 }
  0x35   : > { %v971_v28 = vpop.eup %970  ;;  %888 = vmatprep.subr.bf16.mxu0 %v1060_v1  ;;  %868 = vmatprep.subr.bf16.mxu1 %v1060_v1  ;;  %v564_v1 = vrot.slane %v497_v56, 1 }
  0x36   : > { %v318_v29 = vsub.f32 1.0, %v971_v28  ;;  %v326_v30 = vadd.f32 1e-08, %v971_v28  ;;  %v316_v33 = vmul.f32 %v971_v28, %v971_v28 }
  0x37   : > { %v566_v10 = vmul.f32 %v564_v1, %v497_v56 }
  0x38   : > { %v319_v31 = vadd.f32 1e-08, %v318_v29  ;;  %972 = vlog2.f32 %v326_v30  ;;  %889 = vmatpush3.bf16.msk.msra.mxu0 %vm814_vm8, %v1064_v15  ;;  %869 = vmatpush3.bf16.msk.msra.mxu1 %vm814_vm8, %v1064_v15  ;;  %v324_v32 = vmul.f32 %v318_v29, %v318_v29  ;;  %v317_v38 = vmul.f32 0.75, %v316_v33 }
  0x39   : > { %v618_v20 = vrot.slane %v566_v10, %v526_v9  ;;  %v516_v33 = vrot.slane %v497_v56, %v515_v63 }
  0x3a   : > { %974 = vlog2.f32 %v319_v31  ;;  %v325_v35 = vmul.f32 0.25, %v324_v32  ;;  %v537_v31 = vsub.s32 3, %v1156_v2 }
  0x42   : > { %v973_v34 = vpop.eup %972 }
  0x43   : > { %v328_v36 = vmul.f32 0.6931472, %v973_v34 }
  0x44   : > { %v975_v37 = vpop.eup %974 }
  0x45   : > { %v321_v39 = vmul.f32 0.6931472, %v975_v37  ;;  %v329_v40 = vsub.f32 0.0, %v328_v36 }
  0x47   : > { %v322_v41 = vsub.f32 0.0, %v321_v39  ;;  %v330_v42 = vmul.f32 %v329_v40, %v325_v35 }
  0x49   : > { %v323_v43 = vmul.f32 %v322_v41, %v317_v38 }
  0x4b   : > { %v331_v44 = vsub.f32 %v330_v42, %v323_v43  ;;  %v538_v42 = vrot.slane %v497_v56, %v537_v31 }
  0x4d   : > { %v410_v45 = vpack.c.bf16 %v331_v44, %v331_v44 }
  0x4f   : > { %v411_v46 = vunpack.c.l.bf16 %v410_v45  ;;  %891 = vmatmul.mubr.bf16.vlgmr.msra.gmra.mrb[0].mxu0 %v410_v45 }
  0x51   : > { %v412_v47 = vsub.f32 %v331_v44, %v411_v46 }
  0x53   : > { %v413_v48 = vpack.c.bf16 %v412_v47, %v412_v47  ;;  %v527_v47 = vrot.slane %v497_v56, %v526_v9 }
  0x55   : > { %871 = vmatmul.mubr.bf16.vlgmr.msra.gmra.mrb[0].mxu1 %v413_v48 }
  0x8f   : > { %v549_v49 = vpop.permute.xlu0 %548 }
  0x90   : > { %v552_v50 = vadd.f32 %v549_v49, %v1180_v11  ;;  %v551_v51 = vsub.f32 %v1180_v11, %v549_v49 }
  0x92   : > { %590 = vperm.xlu0 %960, %v552_v50   ;;  %569 = vperm.xlu1 %959, %v552_v50  }
  0x93   : > { %v560_v52 = vpop.permute.xlu0 %559 }
  0x94   : > { %v562_v54 = vmul.f32 %v560_v52, %v1180_v11 }
  0x96   : > { %579 = vperm.xlu1 %959, %v551_v51   ;;  %963 = vset.pattern.permute.xlu0 %v1063_v4 }
  0x97   : > { %500 = vperm.xlu0 %963, %v1180_v11  }
  0x9a   : > { %961 = vset.pattern.permute.xlu1 %v1062_v3 }
  0x9b   : > { %599 = vperm.xlu1 %961, %v551_v51   ;;  %966 = vset.pattern.permute.xlu0 %v1067_v53 }
  0x9c   : > { %532 = vperm.xlu0 %966, %v1180_v11  }
  0x9f   : > { %962 = vset.pattern.permute.xlu1 %v1068_v55 }
  0xa0   : > { %612 = vperm.xlu1 %962, %v562_v54   ;;  %967 = vset.pattern.permute.xlu0 %v1068_v55 }
  0xa4   : > { %964 = vset.pattern.permute.xlu1 %v1062_v3  ;;  %v575_v3 = vrot.slane %v558_v61, %v505_v60 }
  0xa5   : > { %510 = vperm.xlu1 %964, %v1180_v11  }
  0xa9   : > { %965 = vset.pattern.permute.xlu1 %v1068_v55 }
  0xaa   : > { %521 = vperm.xlu1 %965, %v1180_v11  }
 0x111   : > { %v570_v62 = vpop.permute.xlu1 %569  ;;  %v591_v6 = vpop.permute.xlu0 %590 }
 0x112   : > { %v576_v11 = vmin.f32 %v570_v62, %v575_v3  ;;  %v621_v13 = vmax.f32 %v570_v62, %v575_v3  ;;  %v597_v14 = vmin.f32 %v591_v6, %v596_v5  ;;  %v624_v16 = vmax.f32 %v591_v6, %v596_v5 }
 0x115   : > { %v580_v4 = vpop.permute.xlu1 %579 }
 0x116   : > { %v586_v7 = vmax.f32 %v580_v4, %v585_v0  ;;  %v622_v12 = vmin.f32 %v580_v4, %v585_v0  ;;  %v501_v29 = vpop.permute.xlu0 %500 }
 0x117   : > { %v507_v36 = vsub.f32 %v501_v29, %v506_v24 }
 0x118   : > { %v587_v17 = vsub.f32 %v576_v11, %v586_v7  ;;  %v623_v21 = vsub.f32 %v621_v13, %v622_v12 }
 0x119   : > { %v508_v46 = vand.u32 2147483647, %v507_v36 }
 0x11a   : > { %v600_v15 = vpop.permute.xlu1 %599  ;;  %v588_v25 = vmax.f32 %v587_v17, 0.0 }
 0x11b   : > { %v606_v18 = vmax.f32 %v600_v15, %v605_v8  ;;  %v625_v19 = vmin.f32 %v600_v15, %v605_v8  ;;  %v533_v45 = vpop.permute.xlu0 %532 }
 0x11c   : > { %v539_v51 = vsub.f32 %v533_v45, %v538_v42 }
 0x11d   : > { %v607_v22 = vsub.f32 %v597_v14, %v606_v18  ;;  %v626_v23 = vsub.f32 %v624_v16, %v625_v19 }
 0x11e   : > { %v540_v59 = vand.u32 2147483647, %v539_v51 }
 0x11f   : > { %v608_v26 = vmax.f32 %v607_v22, 0.0  ;;  %v627_v27 = vmul.f32 %v626_v23, %v623_v21  ;;  %v613_v28 = vpop.permute.xlu1 %612 }
 0x120   : > { %v619_v30 = vadd.f32 %v618_v20, %v613_v28 }
 0x121   : > { %v609_v32 = vmul.f32 %v608_v26, %v588_v25  ;;  %v630_v35 = vadd.f32 1e-08, %v627_v27 }
 0x122   : > { %v488_v34 = vpop.f32.mrb[0].mxu0 }
 0x123   : > { %v892_v37 = vpop.f32.mrb[1].mxu0  ;;  %v620_v38 = vsub.f32 %v619_v30, %v609_v32  ;;  %976 = vrcp.f32 %v630_v35 }
 0x124   : > { %v491_v39 = vpop.f32.mrb[2].mxu0  ;;  %v511_v40 = vpop.permute.xlu1 %510 }
 0x125   : > { %v893_v41 = vpop.f32.mrb[3].mxu0  ;;  %v628_v43 = vadd.f32 1e-08, %v620_v38  ;;  %v517_v44 = vsub.f32 %v511_v40, %v516_v33 }
 0x127   : > { %978 = vrcp.f32 %v628_v43  ;;  %v518_v2 = vand.u32 2147483647, %v517_v44 }
 0x128   : > { %v448_v48 = vpop.f32.mrb[0].mxu1 }
 0x129   : > { %v489_v49 = vadd.f32 %v488_v34, %v448_v48  ;;  %v872_v50 = vpop.f32.mrb[1].mxu1  ;;  %v522_v52 = vpop.permute.xlu1 %521  ;;  %v519_v54 = vadd.f32 %v518_v2, %v508_v46 }
 0x12a   : > { %v451_v53 = vpop.f32.mrb[2].mxu1  ;;  %v528_v55 = vsub.f32 %v522_v52, %v527_v47 }
 0x12b   : > { %v873_v57 = vpop.f32.mrb[3].mxu1  ;;  %v494_v62 = vmul.f32 2.0, %v489_v49 }
 0x12c   : > { %v529_v58 = vand.u32 2147483647, %v528_v55 }
 0x12d   : > { %v977_v61 = vpop.eup %976 }
 0x12e   : > { %v530_v60 = vadd.f32 %v529_v58, %v519_v54  ;;  %v634_v4 = vmul.f32 %v977_v61, %v620_v38 }
 0x130   : > { %v541_v63 = vadd.f32 %v540_v59, %v530_v60 }
 0x131   : > { %v979_v56 = vpop.eup %978 }
 0x132   : > { %v632_v0 = vmul.f32 %v979_v56, %v609_v32  ;;  %v543_v1 = vmul.f32 5.0, %v541_v63 }
 0x134   : > { %v633_v3 = vsub.f32 1.0, %v632_v0  ;;  %v544_v5 = vadd.f32 %v543_v1, %v494_v62 }
 0x136   : > { %v635_v6 = vsub.f32 %v633_v3, %v634_v4 }
 0x138   : > { %v637_v7 = vmul.f32 2.0, %v635_v6 }
 0x13a   : > { %v638_v8 = vadd.f32 %v637_v7, %v544_v5 }
 0x13c   : > { %639 = vst [vmem:[%s280_s7] sm:$0xff] %v638_v8 }
 0x13d   : > { %993 = shalt.err (!%p990_p5)
}
 0x13e   : > { %s994_s22 = scalar_lea.hbm %s1264_s11, 128  ;;  %s998_s30 = scalar_lea.hbm %s1315_s4, 256 }
 0x13f   : > { %p995_p6 = scmp.ne.s32.totalorder %s1264_s11, %s994_s22  ;;  %p999_p10 = scmp.lt.u32.totalorder %s1264_s11, %s1315_s4 }
 0x140   : > { %p1000_p11 = scmp.lt.u32.totalorder %s998_s30, %s994_s22  ;;  %p1002_p13 = scmp.lt.u32.totalorder %s994_s22, %s1264_s11 }
 0x141   : > { %p996_p7 = pnand %p995_p6, %p1135_p4 }
 0x142   : > { %p1001_p12 = por %p1000_p11, %p999_p10 }
 0x143   : > { %p997_p9 = pneg %p996_p7 }
 0x144   : > { %p1003_p0 = por %p1002_p13, %p1001_p12 }
 0x146   : > { %p1004_p1 = pnand %p1003_p0, %p997_p9 }
 0x148   : > { %1007 = shalt.err (!%p1004_p1)
}
 0x149   : > { %895 = dma.vmem_to_hbm [thread:$0]  (%p1135_p4), %s1266_s8, 128, %s1264_s11, %s641_s12  }
 0x14a PF: > { %p901_p2 = scmp.ge.s32.totalorder %s1058_s20, 2  ;;  %s668_s6 = sand.u32 1, %s1038_s15  }
 0x14b   : > { %s669_s7 = scalar_lea.sflag [#allocation3], %s668_s6 }
 0x14c   : > { %p898_p3 = pnand %p901_p2, %p1142_p8 }
 0x14e   : > { %1033 = dma.done.wait (!%p898_p3), %s669_s7, 128  }
 0x14f   : > { %1035 = vsyncadd (!%p898_p3), %s669_s7, 4294967168  ;;  %s17_s20 = sadd.s32 1, %s1058_s20   ;;  %s1318_s15 = smov %s1042_s16 }
 0x150   : > { %p14_p5 = scmp.ge.s32.totalorder %s17_s20, 4   ;;  %s1319_s16 = smov %s1046_s17 }
 0x151   : > { %s1320_s17 = smov %s1148_s28  ;;  %s1321_s18 = smov %s1054_s19 }
 0x152   : > { %s1322_s19 = smov %s1324_s23  ;;  %16 = sbr.rel (!%p14_p5) target bundleno = 4 (0x4), region = 80 }
 0x159   :  { %674 = vsyncpa [#allocation3], 1 }
 0x15a   :  { %676 = vsyncpa [#allocation3 + $0x1], 1 }

</bundles_post_ra>
